<compile_context>
chip_gen: v7x
topology: tpu7x:2x2x1
jax: 0.10.0
libtpu: 0.0.40
codegen_flags: <defaults>
</compile_context>

<pallas_src>
import functools

import jax
import jax.numpy as jnp
import numpy as np
from jax.experimental import pallas as pl
from jax.experimental.pallas import tpu as pltpu


def _pooled_kernel(h_ref, o_ref, *, reduction, normalize, scale):
    """h_ref: (TB, TS, H) block of hidden states; o_ref: (TB, H) f32 resident accumulator."""
    s = pl.program_id(1)

    if reduction == "max":
        @pl.when(s == 0)
        def _init():
            o_ref[...] = jnp.full_like(o_ref, -jnp.inf)
        # Reduce in the input dtype (no full-block f32 temp); cast only the (TB, H) result.
        blk_max = jnp.max(h_ref[...], axis=1)
        o_ref[...] = jnp.maximum(o_ref[...], blk_max.astype(jnp.float32))
    else:  # "mean" / "sum": running f32 sum over sequence tiles.
        @pl.when(s == 0)
        def _init():
            o_ref[...] = jnp.zeros_like(o_ref)
        o_ref[...] += jnp.sum(h_ref[...], axis=1, dtype=jnp.float32)

    needs_finalize = normalize or (scale != 1.0)
    if needs_finalize:
        @pl.when(s == pl.num_programs(1) - 1)
        def _finalize():
            red = o_ref[...]
            if scale != 1.0:                         # mean = sum * (1/S)
                red = red * scale
            if normalize:
                # x / max(||x||, 1e-8)  ==  x * rsqrt(max(||x||^2, 1e-16))
                ssq = jnp.sum(red * red, axis=-1, keepdims=True)
                red = red * jax.lax.rsqrt(jnp.maximum(ssq, 1e-16))
                red = jnp.where(jnp.isnan(red), 0.0, red)   # torch: embedded[isnan] = 0
            o_ref[...] = red


def _weighted_pooled_kernel(h_ref, w_ref, o_ref, *, normalize):
    """tfidf-weighted sum: h_ref (TB, TS, H), w_ref (TB, TS, 1) f32, o_ref (TB, H) f32."""
    s = pl.program_id(1)

    @pl.when(s == 0)
    def _init():
        o_ref[...] = jnp.zeros_like(o_ref)

    # Weights already laid out (TB, TS, 1): S on sublanes, broadcast along lanes only.
    # The f32 promotion is limited to this (TB, TS, H) tile, not the whole (TB, S, H) block.
    o_ref[...] += jnp.sum(h_ref[...].astype(jnp.float32) * w_ref[...], axis=1)

    @pl.when(s == pl.num_programs(1) - 1)
    def _finalize():
        red = o_ref[...]
        if normalize:
            ssq = jnp.sum(red * red, axis=-1, keepdims=True)
            red = red * jax.lax.rsqrt(jnp.maximum(ssq, 1e-16))
            red = jnp.where(jnp.isnan(red), 0.0, red)
        o_ref[...] = red


def _pick_seq_tile(S, seq_tile):
    """Largest divisor of S that is a multiple of 8 and <= seq_tile (or S itself)."""
    if S <= seq_tile:
        return S
    for d in range(seq_tile, 7, -1):
        if S % d == 0 and d % 8 == 0:
            return d
    return S


def bert_embed_forward(hidden_bsh, *, reduction="mean", normalize=True,
                       weights_sb=None, batch_tile=8, seq_tile=256,
                       vmem_limit_bytes=64 * 1024 * 1024):
    """Pooled sentence embeddings from pretrained-model hidden states.

    hidden_bsh:  (B, S, H) hidden states, batch-first, f32 or bf16 (bf16 recommended —
                 this kernel is HBM-bandwidth bound; all math is f32 internally).
    weights_sb:  optional (S, B) tfidf weights (used with reduction='mean', like torch).
    Returns (B, H) float32 embeddings (or (S, B, H) pass-through for reduction='none').
    """
    if reduction not in ("mean", "sum", "max", "none"):
        raise ValueError(f"unknown reduction: {reduction}")

    B, S, H = hidden_bsh.shape
    if reduction == "none":
        # torch returns the raw seq-first hidden states; nothing to fuse.
        return jnp.transpose(hidden_bsh, (1, 0, 2))

    # Batch tiles (outer, "parallel") x sequence tiles (inner, "arbitrary").
    # Ragged last batch tile: no jnp.pad — Pallas clips the partial block; out-of-bounds
    # rows only produce out-of-bounds output rows whose write-back is masked.
    tb = min(batch_tile, B)
    n_b = pl.cdiv(B, tb)
    ts = _pick_seq_tile(S, seq_tile)
    n_s = S // ts

    use_weights = (reduction == "mean") and (weights_sb is not None)

    in_specs = [pl.BlockSpec((tb, ts, H), lambda b, s: (b, s, 0))]
    args = [hidden_bsh]
    if use_weights:
        # Pre-shape weights (B, S, 1): S lands on the sublane axis inside the kernel,
        # so no in-kernel layout shuffle; tiny compared with the activations.
        w_bs1 = jnp.transpose(weights_sb, (1, 0)).astype(jnp.float32)[:, :, None]
        in_specs.append(pl.BlockSpec((tb, ts, 1), lambda b, s: (b, s, 0)))
        args.append(w_bs1)
        kernel = functools.partial(_weighted_pooled_kernel, normalize=normalize)
    else:
        scale = (1.0 / S) if reduction == "mean" else 1.0
        kernel = functools.partial(_pooled_kernel, reduction=reduction,
                                   normalize=normalize, scale=scale)

    out = pl.pallas_call(
        kernel,
        out_shape=jax.ShapeDtypeStruct((B, H), jnp.float32),
        grid_spec=pltpu.PrefetchScalarGridSpec(
            num_scalar_prefetch=0,
            grid=(n_b, n_s),
            in_specs=in_specs,
            # Output block is resident across the sequence axis -> acts as the f32
            # accumulator; single lane-dense (TB, H) write-back per batch tile.
            out_specs=pl.BlockSpec((tb, H), lambda b, s: (b, 0)),
        ),
        compiler_params=pltpu.CompilerParams(
            dimension_semantics=("parallel", "arbitrary"),
            vmem_limit_bytes=vmem_limit_bytes,
        ),
    )(*args)
    return out


def bert_reference(hidden_bsh, *, reduction="mean", normalize=True, weights=None):
    """Pure-JAX replica of the PyTorch forward (post-encoder part) for verification."""
    embedded = jnp.transpose(hidden_bsh, (1, 0, 2)).astype(jnp.float32)  # (S, B, H)
    if reduction == "none":
        return embedded
    if reduction == "mean":
        if weights is not None:
            embedded = jnp.sum(embedded * weights[:, :, None], axis=0)
        else:
            embedded = jnp.mean(embedded, axis=0)
    if reduction == "max":
        embedded = jnp.max(embedded, axis=0)
    if reduction == "sum":
        embedded = jnp.sum(embedded, axis=0)
    if normalize:
        norm = jnp.linalg.norm(embedded, ord=2, axis=1, keepdims=True)
        embedded = embedded / jnp.clip(norm, 1e-8, None)
        embedded = jnp.where(jnp.isnan(embedded), 0.0, embedded)
    return embedded


if __name__ == "__main__":
    key = jax.random.PRNGKey(0)
    k_emb, k_tok, k_w = jax.random.split(key, 3)

    # Small, module-consistent sizes: seq, batch, hidden (embedding_size).
    S, B, H = 8, 2, 32
    VOCAB = 50

    # Stand-in for the pretrained BERT encoder (plain-JAX glue).
    # TODO(synk): the real module runs the pretrained 12-layer BertModel here.
    emb_table = jax.random.normal(k_emb, (VOCAB, H), dtype=jnp.float32) * 0.5
    tokens_sb = jax.random.randint(k_tok, (S, B), 0, VOCAB, dtype=jnp.int32)  # x: (S, B)
    hidden_f32 = emb_table[tokens_sb.T]                       # (B, S, H) "bert" output
    hidden_bf16 = hidden_f32.astype(jnp.bfloat16)             # encoder-native bf16 path
    tfidf_sb = jax.random.uniform(k_w, (S, B), jnp.float32)   # tfidf weights (S, B)

    for hidden in (hidden_f32, hidden_bf16):
        for red in ("mean", "sum", "max"):
            out = bert_embed_forward(hidden, reduction=red, normalize=True)
            jax.block_until_ready(out)
            ref = bert_reference(hidden, reduction=red, normalize=True)
            np.testing.assert_allclose(np.asarray(out), np.asarray(ref),
                                       rtol=1e-5, atol=1e-5)

        # tfidf-weighted sum + normalize
        out = bert_embed_forward(hidden, reduction="mean", normalize=True,
                                 weights_sb=tfidf_sb)
        ref = bert_reference(hidden, reduction="mean", normalize=True, weights=tfidf_sb)
        np.testing.assert_allclose(np.asarray(out), np.asarray(ref),
                                   rtol=1e-5, atol=1e-5)

    # Multi-tile exercise: 2 batch tiles (last one ragged/partial) x 2 sequence tiles.
    B2, S2, H2 = 10, 16, 128
    h2 = jax.random.normal(jax.random.PRNGKey(1), (B2, S2, H2)).astype(jnp.bfloat16)
    for red in ("mean", "sum", "max"):
        out = bert_embed_forward(h2, reduction=red, normalize=True,
                                 batch_tile=8, seq_tile=8)
        ref = bert_reference(h2, reduction=red, normalize=True)
        np.testing.assert_allclose(np.asarray(out), np.asarray(ref),
                                   rtol=1e-4, atol=1e-4)
    w2 = jax.random.uniform(jax.random.PRNGKey(2), (S2, B2), jnp.float32)
    out = bert_embed_forward(h2, reduction="mean", normalize=True, weights_sb=w2,
                             batch_tile=8, seq_tile=8)
    ref = bert_reference(h2, reduction="mean", normalize=True, weights=w2)
    np.testing.assert_allclose(np.asarray(out), np.asarray(ref), rtol=1e-4, atol=1e-4)

    jax.block_until_ready(out)
    print("KERNEL_OK")
</pallas_src>

<mosaic_0001>
module attributes {stable_mosaic.version = 11 : i64} {
  func.func @_pooled_kernel(%arg0: i32, %arg1: i32, %arg2: memref<2x8x32xf32, #tpu.memory_space<vmem>>, %arg3: memref<2x32xf32, #tpu.memory_space<vmem>>) attributes {dimension_semantics = [#tpu.dimension_semantics<parallel>, #tpu.dimension_semantics<arbitrary>], iteration_bounds = array<i64: 1, 1>, scalar_prefetch = 0 : i64, scratch_operands = 0 : i64, tpu.core_type = #tpu.core_type<tc>, window_params = [{transform_indices = @transform_0, window_bounds = array<i64: 2, 8, 32>}, {transform_indices = @transform_1, window_bounds = array<i64: 2, 32>}]} {
    %c0_i32 = arith.constant 0 : i32
    %0 = arith.cmpi eq, %arg1, %c0_i32 : i32
    %1 = arith.extui %0 : i1 to i32
    %c0_i32_0 = arith.constant 0 : i32
    %2 = arith.cmpi ne, %1, %c0_i32_0 : i32
    scf.if %2 {
      %cst_9 = arith.constant 0.000000e+00 : f32
      %11 = vector.broadcast %cst_9 : f32 to vector<2x32xf32>
      %c0_10 = arith.constant 0 : index
      %c0_11 = arith.constant 0 : index
      %12 = vector.load %arg3[%c0_10, %c0_11] : memref<2x32xf32, #tpu.memory_space<vmem>>, vector<2x32xf32>
      tpu.vector_store %arg3[%c0_10, %c0_11], %11 {strides = array<i32>} : memref<2x32xf32, #tpu.memory_space<vmem>>, vector<2x32xf32>,
    } else {
    }
    %c0 = arith.constant 0 : index
    %c0_1 = arith.constant 0 : index
    %3 = vector.load %arg3[%c0, %c0_1] : memref<2x32xf32, #tpu.memory_space<vmem>>, vector<2x32xf32>
    %c0_2 = arith.constant 0 : index
    %c0_3 = arith.constant 0 : index
    %c0_4 = arith.constant 0 : index
    %4 = vector.load %arg2[%c0_2, %c0_3, %c0_4] : memref<2x8x32xf32, #tpu.memory_space<vmem>>, vector<2x8x32xf32>
    %cst = arith.constant dense<0.000000e+00> : vector<2x32xf32>
    %5 = vector.multi_reduction <add>, %4, %cst [1] : vector<2x8x32xf32> to vector<2x32xf32>
    %6 = arith.addf %3, %5 : vector<2x32xf32>
    %c0_5 = arith.constant 0 : index
    %c0_6 = arith.constant 0 : index
    %7 = vector.load %arg3[%c0_5, %c0_6] : memref<2x32xf32, #tpu.memory_space<vmem>>, vector<2x32xf32>
    tpu.vector_store %arg3[%c0_5, %c0_6], %6 {strides = array<i32>} : memref<2x32xf32, #tpu.memory_space<vmem>>, vector<2x32xf32>,
    %c0_i32_7 = arith.constant 0 : i32
    %8 = arith.cmpi eq, %arg1, %c0_i32_7 : i32
    %9 = arith.extui %8 : i1 to i32
    %c0_i32_8 = arith.constant 0 : i32
    %10 = arith.cmpi ne, %9, %c0_i32_8 : i32
    scf.if %10 {
      %c0_9 = arith.constant 0 : index
      %c0_10 = arith.constant 0 : index
      %11 = vector.load %arg3[%c0_9, %c0_10] : memref<2x32xf32, #tpu.memory_space<vmem>>, vector<2x32xf32>
      %cst_11 = arith.constant 1.250000e-01 : f32
      %12 = vector.broadcast %cst_11 : f32 to vector<2x32xf32>
      %13 = arith.mulf %11, %12 : vector<2x32xf32>
      %14 = arith.mulf %13, %13 : vector<2x32xf32>
      %cst_12 = arith.constant dense<0.000000e+00> : vector<2xf32>
      %15 = vector.multi_reduction <add>, %14, %cst_12 [1] : vector<2x32xf32> to vector<2xf32>
      %16 = vector.shape_cast %15 : vector<2xf32> to vector<2x1xf32>
      %cst_13 = arith.constant 1.000000e-16 : f32
      %17 = vector.broadcast %cst_13 : f32 to vector<2x1xf32>
      %18 = arith.maximumf %16, %17 : vector<2x1xf32>
      %19 = math.rsqrt %18 : vector<2x1xf32>
      %20 = vector.broadcast %19 : vector<2x1xf32> to vector<2x32xf32>
      %21 = arith.mulf %13, %20 : vector<2x32xf32>
      %22 = arith.cmpf one, %21, %21 : vector<2x32xf32>
      %cst_14 = arith.constant 0.000000e+00 : f32
      %23 = vector.broadcast %cst_14 : f32 to vector<2x32xf32>
      %24 = arith.select %22, %23, %21 : vector<2x32xi1>, vector<2x32xf32>
      %c0_15 = arith.constant 0 : index
      %c0_16 = arith.constant 0 : index
      %25 = vector.load %arg3[%c0_15, %c0_16] : memref<2x32xf32, #tpu.memory_space<vmem>>, vector<2x32xf32>
      tpu.vector_store %arg3[%c0_15, %c0_16], %24 {strides = array<i32>} : memref<2x32xf32, #tpu.memory_space<vmem>>, vector<2x32xf32>,
    } else {
    }
    return
  }
  func.func @transform_0(%arg0: i32, %arg1: i32) -> (i32, i32, i32) {
    %c0_i32 = arith.constant 0 : i32
    %c0_i32_0 = arith.constant 0 : i32
    return %arg0, %arg1, %c0_i32 : i32, i32, i32
  }
  func.func @transform_1(%arg0: i32, %arg1: i32) -> (i32, i32) {
    %c0_i32 = arith.constant 0 : i32
    %c0_i32_0 = arith.constant 0 : i32
    return %arg0, %c0_i32 : i32, i32
  }
}

</mosaic_0001>

<bundles_post_ra>
// kernel: tpu_custom_call.1
= control target key start
LH: loop header
LB: loop body
LE: loop exit
PB: predicated region body
PF: predicated region fallthrough
CT: control target
= control target key end

     0   :  { %6 = vsyncpa [#allocation3], 0  ;;  %s183_s0 = inlined_call_operand.hbm [shape: f32[2,8,32], index: 0, kind: input, shape index: {}]   ;;  %s184_s1 = inlined_call_operand.hbm [shape: f32[2,32], index: 1, kind: output, shape index: {}]  }
   0x1   :  { %7 = vsyncpa [#allocation4], 0  ;;  %s140_s6 = smov [#allocation2]   ;;  %s92_s10 = scalar_lea.hbm %s183_s0, 256 }
   0x2   :  { %s13_s7 = sshll.u32 %s140_s6, 4  ;;  %p93_p0 = scmp.ne.s32.totalorder %s183_s0, %s92_s10  ;;  %s14_s7 = int_to_ptr.vmem [resolvable:$true] %s13_s7 }
   0x3   :  { %p96_p1 = scmp.lt.u32.totalorder %s92_s10, %s183_s0 }
   0x5   :  { %p98_p2 = pnand %p96_p1, %p93_p0 }
   0x7   :  { %101 = shalt.err (!%p98_p2)
}
   0x8   :  { %s102_s15 = scalar_lea.vmem %s14_s7, 256  ;;  %p107_p4 = scmp.lt.s32.totalorder %s14_s7, %s14_s7 }
   0x9   :  { %p103_p3 = scmp.ne.s32.totalorder %s14_s7, %s102_s15  ;;  %p108_p5 = scmp.lt.s32.totalorder %s102_s15, %s102_s15 }
   0xb   :  { %p109_p6 = por %p108_p5, %p107_p4 }
   0xd   :  { %p110_p7 = pnand %p109_p6, %p103_p3 }
   0xf   :  { %113 = shalt.err (!%p110_p7)
}
  0x10   :  { %s141_s16 = smov 128   ;;  %s142_s17 = smov 8  }
  0x11   :  { %19 = dma.hbm_to_vmem [thread:$0]  %s183_s0, 256, %s14_s7, [#allocation3], %s141_s16, %s141_s16, %s142_s17  }
  0x12   :  { %136 = dma.done.wait [#allocation3], 256  }
  0x13   :  { %137 = vsyncadd [#allocation3], 4294967040  ;;  %vm27_vm0 = vcmask 254976   ;;  %v143_v0 = vmov 0.0   ;;  %vm32_vm1 = vcmask 261120   ;;  %v30_v1 = vld [vmem:[#allocation2] sm:$0xff] }
  0x14   :  { %28 = vst.msk [vmem:[#allocation5] sm:$0x3] %vm27_vm0, %v143_v0  ;;  %v31_v2 = vld [vmem:[#allocation2 + $0x8] sm:$0xff]  ;;  %v33_v3 = vsel %vm32_vm1, %v30_v1, 0.0  ;;  %vm49_vm2 = vcmask 1041409   ;;  %s144_s0 = smov [#allocation5]  }
  0x15   :  { %v40_v4 = vsel %vm32_vm1, %v31_v2, 0.0  ;;  %v34_v5 = vrot.slane %v33_v3, 4  ;;  %s76_s20 = sshll.u32 %s144_s0, 4  ;;  %s77_s20 = int_to_ptr.vmem [resolvable:$true] %s76_s20 }
  0x16   :  { %v41_v6 = vrot.slane %v40_v4, 4  ;;  %s114_s21 = scalar_lea.vmem %s77_s20, 32  ;;  %p119_p9 = scmp.lt.s32.totalorder %s77_s20, %s77_s20 }
  0x17   :  { %v35_v7 = vadd.f32 %v34_v5, %v33_v3  ;;  %p115_p8 = scmp.ne.s32.totalorder %s77_s20, %s114_s21  ;;  %p120_p10 = scmp.lt.s32.totalorder %s114_s21, %s114_s21 }
  0x18   :  { %v42_v8 = vadd.f32 %v41_v6, %v40_v4 }
  0x19   :  { %v36_v9 = vrot.slane %v35_v7, 2  ;;  %p121_p11 = por %p120_p10, %p119_p9 }
  0x1a   :  { %v43_v10 = vrot.slane %v42_v8, 2 }
  0x1b   :  { %v37_v11 = vadd.f32 %v36_v9, %v35_v7  ;;  %v29_v15 = vld [vmem:[#allocation5] sm:$0x3]  ;;  %p122_p12 = pnand %p121_p11, %p115_p8 }
  0x1c   :  { %v44_v12 = vadd.f32 %v43_v10, %v42_v8 }
  0x1d   :  { %v38_v13 = vrot.slane %v37_v11, 1 }
  0x1e   :  { %v45_v14 = vrot.slane %v44_v12, 1 }
  0x1f   :  { %v39_v16 = vadd.f32 %v38_v13, %v37_v11 }
  0x20   :  { %v46_v17 = vadd.f32 %v45_v14, %v44_v12 }
  0x22   :  { %v50_v18 = vsel %vm49_vm2, %v46_v17, %v39_v16 }
  0x23   :  { %v52_v19 = vadd.f32 %v50_v18, %v29_v15 }
  0x25   :  { %54 = vst.msk [vmem:[#allocation5] sm:$0x3] %vm27_vm0, %v52_v19 }
  0x2c   :  { %v58_v20 = vld [vmem:[#allocation5] sm:$0x3] }
  0x2d   :  { %v59_v21 = vmul.f32 0.125, %v58_v20 }
  0x2f   :  { %v60_v22 = vmul.f32 %v59_v21, %v59_v21 }
  0x31   :  { %v61_v23 = vsel %vm27_vm0, %v60_v22, 0.0 }
  0x32   :  { %62 = vadd.xlane.f32.xlu0 %v61_v23 }
  0xbf   :  { %v63_v24 = vpop.xlane.xlu0 %62 }
  0xc0   :  { %v64_v25 = vmax.f32 %v63_v24, 1e-16 }
  0xc2   :  { %90 = vrsqrt.f32 %v64_v25 }
  0xcc   :  { %v91_v26 = vpop.eup %90 }
  0xcd   :  { %v66_v27 = vmul.f32 %v91_v26, %v59_v21 }
  0xcf   :  { %vm67_vm3 = vcmp.ne.f32.partialorder %v66_v27, %v66_v27 }
  0xd0   :  { %v68_v28 = vsel %vm67_vm3, 0.0, %v66_v27 }
  0xd1   :  { %69 = vst.msk [vmem:[#allocation5] sm:$0x3] %vm27_vm0, %v68_v28 }
  0xd2   :  { %125 = shalt.err (!%p122_p12)
}
  0xd3   :  { %s126_s24 = scalar_lea.hbm %s184_s1, 32 }
  0xd4   :  { %p127_p13 = scmp.ne.s32.totalorder %s184_s1, %s126_s24  ;;  %p130_p0 = scmp.lt.u32.totalorder %s126_s24, %s184_s1 }
  0xd6   :  { %p132_p1 = pnand %p130_p0, %p127_p13 }
  0xd8   :  { %135 = shalt.err (!%p132_p1)
}
  0xd9   :  { %79 = dma.vmem_to_hbm [thread:$0]  %s77_s20, 32, %s184_s1, [#allocation4]  }
  0xda   :  { %138 = dma.done.wait [#allocation4], 32  }
  0xdb   :  { %139 = vsyncadd [#allocation4], 4294967264 }
  0xdc   :  { %83 = vsyncpa [#allocation3], 1 }
  0xdd   :  { %84 = vsyncpa [#allocation4], 1 }

</bundles_post_ra>
